<compile_context>
chip_gen: v5e
topology: v5e:2x2
jax: 0.10.0
libtpu: 0.0.40
codegen_flags: <defaults>
</compile_context>

<pallas_src>
import functools

import jax
import jax.numpy as jnp
from jax.experimental import pallas as pl
from jax.experimental.pallas import tpu as pltpu

KERNEL_SIZE = 3
STRIDE = 3           # nn.MaxPool2d default: stride = kernel_size
CEIL_MODE = True

_LANE = 128


def _pool_out_size(n):
    """PyTorch MaxPool2d output size for kernel=stride=3, pad=0, ceil_mode=True."""
    o = -(-(n - KERNEL_SIZE) // STRIDE) + 1          # ceil((n-k)/s) + 1
    if (o - 1) * STRIDE >= n:                        # last window must start inside input
        o -= 1
    return o


def _round_up(x, m):
    return -(-x // m) * m


def _sublane_multiple(itemsize):
    # dtype-aware second-minor tiling multiple (f32:8, bf16:16, int8/fp8:32)
    return {8: 8, 4: 8, 2: 16, 1: 32}.get(itemsize, 8)


def _fill_value(dtype):
    # Identity-ish element for max: finite dtype minimum (safe for inf-less floats).
    dtype = jnp.dtype(dtype)
    if jnp.issubdtype(dtype, jnp.floating):
        return float(jnp.finfo(dtype).min)
    if jnp.issubdtype(dtype, jnp.integer):
        return int(jnp.iinfo(dtype).min)
    raise TypeError(f"unsupported dtype for maxpool: {dtype}")


def _vmem_capacity_bytes():
    try:
        return int(pltpu.get_tpu_info().vmem_capacity_bytes)
    except Exception:
        return 64 * 1024 * 1024                      # conservative (v7x-sized) fallback


def _maxpool_kernel(x_ref, o_ref, *, tho, hb, h, w, wo, need_row_mask, fill):
    """x_ref: (TILE_NC, HB, W)   o_ref: (TILE_NC, THO, WO)."""
    row0 = pl.program_id(1) * hb                     # first global input row in this block

    # ---- pool along H: input rows 3r .. 3r+2 -> pooled row r (pure VPU maxima) ----
    pooled_rows = []
    for r in range(tho):
        taps = []
        for t in range(KERNEL_SIZE):
            rr = KERNEL_SIZE * r + t
            if rr >= hb:                             # static ceil-mode clip (full-H block case)
                continue
            v = x_ref[:, rr:rr + 1, :]               # (TILE_NC, 1, W), contiguous slice
            if need_row_mask:
                # rows past the true H (partial last H block / ceil-mode overhang)
                v = jnp.where(row0 + rr < h, v, jnp.array(fill, dtype=v.dtype))
            taps.append(v)
        acc = taps[0]
        for v in taps[1:]:
            acc = jnp.maximum(acc, v)
        pooled_rows.append(acc)
    y = pooled_rows[0] if len(pooled_rows) == 1 else jnp.concatenate(pooled_rows, axis=1)

    # ---- pool along W: cols 3c .. 3c+2 -> pooled col c (static ceil-mode clip) ----
    cols = []
    for c in range(wo):
        lo = KERNEL_SIZE * c
        hi = min(lo + KERNEL_SIZE, w)
        acc = y[:, :, lo:lo + 1]
        for cc in range(lo + 1, hi):
            acc = jnp.maximum(acc, y[:, :, cc:cc + 1])
        cols.append(acc)
    out = cols[0] if len(cols) == 1 else jnp.concatenate(cols, axis=2)

    o_ref[...] = out.astype(o_ref.dtype)             # single dense store per tile


def my_maxpool2d(x):
    """Equivalent of MyMaxPool2d.forward (nn.MaxPool2d(3, ceil_mode=True)) on NCHW input."""
    n, c, h, w = x.shape
    ho, wo = _pool_out_size(h), _pool_out_size(w)
    nc = n * c
    dtype = x.dtype
    itemsize = dtype.itemsize
    sub = _sublane_multiple(itemsize)

    # Generation-aware VMEM sizing: ~half of physical capacity as the scoped limit
    # (64 MiB on v5e/v6e's 128 MiB parts, 32 MiB on v7x's 64 MiB parts), one third of
    # that as the live in+out block budget (leaves room for double buffering).
    vmem_limit = min(64 * 1024 * 1024, _vmem_capacity_bytes() // 2)
    budget = vmem_limit // 3

    def blk_bytes(tile_nc, hb_, tho_):
        in_b = tile_nc * _round_up(hb_, sub) * _round_up(w, _LANE) * itemsize
        out_b = tile_nc * _round_up(tho_, sub) * _round_up(wo, _LANE) * itemsize
        return in_b + out_b

    # --- H tiling: whole H in one block when small enough (no masking, exact static
    # clipping); otherwise split HO into sublane-aligned chunks of output rows. ---
    if ho <= 128 and blk_bytes(1, h, ho) <= budget:
        tho, hb = ho, h
    else:
        tho = max(sub, min(64, (ho // sub) * sub))
        while tho > sub and blk_bytes(1, KERNEL_SIZE * tho, tho) > budget:
            tho -= sub
        hb = KERNEL_SIZE * tho
        if hb >= h:                                  # degenerate: just take full H
            tho, hb = ho, h
    ho_tiles = pl.cdiv(ho, tho)
    need_row_mask = (ho_tiles * hb) > h              # any block row past the true H?

    # --- NC tiling: as big as VMEM allows, but keep >= ~8 total grid steps when the
    # problem allows (2 TensorCores on v7x x >=4 pipelined steps each). ---
    fit_nc = max(1, budget // blk_bytes(1, hb, tho))
    min_steps = 8
    want_nc_tiles = max(1, pl.cdiv(min_steps, ho_tiles))
    step_nc = max(1, pl.cdiv(nc, want_nc_tiles))
    tile_nc = max(1, min(nc, fit_nc, step_nc))
    nc_tiles = pl.cdiv(nc, tile_nc)

    kernel = functools.partial(
        _maxpool_kernel, tho=tho, hb=hb, h=h, w=w, wo=wo,
        need_row_mask=need_row_mask, fill=_fill_value(dtype))

    x3 = x.reshape(nc, h, w)                         # free reshape, no data movement
    out = pl.pallas_call(
        kernel,
        out_shape=jax.ShapeDtypeStruct((nc, ho, wo), dtype),
        grid=(nc_tiles, ho_tiles),
        in_specs=[pl.BlockSpec((tile_nc, hb, w), lambda i, j: (i, j, 0))],
        out_specs=pl.BlockSpec((tile_nc, tho, wo), lambda i, j: (i, j, 0)),
        compiler_params=pltpu.CompilerParams(
            dimension_semantics=("parallel", "parallel"),
            vmem_limit_bytes=vmem_limit),
    )(x3)

    return out.reshape(n, c, ho, wo)                 # free reshape back to NCHW


if __name__ == "__main__":
    key = jax.random.PRNGKey(0)
    x = jax.random.normal(key, (2, 4, 16, 16), dtype=jnp.float32)

    y = jax.block_until_ready(my_maxpool2d(x))

    # Independent reference: ceil_mode realized via -inf right-padding.
    n, c, h, w = x.shape
    ho, wo = _pool_out_size(h), _pool_out_size(w)
    pad_h = (ho - 1) * STRIDE + KERNEL_SIZE - h
    pad_w = (wo - 1) * STRIDE + KERNEL_SIZE - w
    ref = jax.lax.reduce_window(
        x, -jnp.inf, jax.lax.max,
        window_dimensions=(1, 1, KERNEL_SIZE, KERNEL_SIZE),
        window_strides=(1, 1, STRIDE, STRIDE),
        padding=((0, 0), (0, 0), (0, pad_h), (0, pad_w)),
    )

    assert y.shape == (2, 4, 6, 6), y.shape
    assert jnp.allclose(y, ref), "mismatch vs reduce_window reference"
    print("KERNEL_OK")
</pallas_src>

<mosaic_0001>
module attributes {stable_mosaic.version = 11 : i64} {
  func.func @_maxpool_kernel(%arg0: i32, %arg1: i32, %arg2: memref<1x16x16xf32, #tpu.memory_space<vmem>>, %arg3: memref<1x6x6xf32, #tpu.memory_space<vmem>>) attributes {dimension_semantics = [#tpu.dimension_semantics<parallel>, #tpu.dimension_semantics<parallel>], iteration_bounds = array<i64: 8, 1>, scalar_prefetch = 0 : i64, scratch_operands = 0 : i64, tpu.core_type = #tpu.core_type<tc>, window_params = [{transform_indices = @transform_0, window_bounds = array<i64: 1, 16, 16>}, {transform_indices = @transform_1, window_bounds = array<i64: 1, 6, 6>}]} {
    %c0 = arith.constant 0 : index
    %c0_0 = arith.constant 0 : index
    %c0_1 = arith.constant 0 : index
    %0 = vector.load %arg2[%c0, %c0_0, %c0_1] : memref<1x16x16xf32, #tpu.memory_space<vmem>>, vector<1x1x16xf32>
    %c0_2 = arith.constant 0 : index
    %c1 = arith.constant 1 : index
    %c0_3 = arith.constant 0 : index
    %1 = vector.load %arg2[%c0_2, %c1, %c0_3] : memref<1x16x16xf32, #tpu.memory_space<vmem>>, vector<1x1x16xf32>
    %c0_4 = arith.constant 0 : index
    %c2 = arith.constant 2 : index
    %c0_5 = arith.constant 0 : index
    %2 = vector.load %arg2[%c0_4, %c2, %c0_5] : memref<1x16x16xf32, #tpu.memory_space<vmem>>, vector<1x1x16xf32>
    %3 = arith.maximumf %0, %1 : vector<1x1x16xf32>
    %4 = arith.maximumf %3, %2 : vector<1x1x16xf32>
    %c0_6 = arith.constant 0 : index
    %c3 = arith.constant 3 : index
    %c0_7 = arith.constant 0 : index
    %5 = vector.load %arg2[%c0_6, %c3, %c0_7] : memref<1x16x16xf32, #tpu.memory_space<vmem>>, vector<1x1x16xf32>
    %c0_8 = arith.constant 0 : index
    %c4 = arith.constant 4 : index
    %c0_9 = arith.constant 0 : index
    %6 = vector.load %arg2[%c0_8, %c4, %c0_9] : memref<1x16x16xf32, #tpu.memory_space<vmem>>, vector<1x1x16xf32>
    %c0_10 = arith.constant 0 : index
    %c5 = arith.constant 5 : index
    %c0_11 = arith.constant 0 : index
    %7 = vector.load %arg2[%c0_10, %c5, %c0_11] : memref<1x16x16xf32, #tpu.memory_space<vmem>>, vector<1x1x16xf32>
    %8 = arith.maximumf %5, %6 : vector<1x1x16xf32>
    %9 = arith.maximumf %8, %7 : vector<1x1x16xf32>
    %c0_12 = arith.constant 0 : index
    %c6 = arith.constant 6 : index
    %c0_13 = arith.constant 0 : index
    %10 = vector.load %arg2[%c0_12, %c6, %c0_13] : memref<1x16x16xf32, #tpu.memory_space<vmem>>, vector<1x1x16xf32>
    %c0_14 = arith.constant 0 : index
    %c7 = arith.constant 7 : index
    %c0_15 = arith.constant 0 : index
    %11 = vector.load %arg2[%c0_14, %c7, %c0_15] : memref<1x16x16xf32, #tpu.memory_space<vmem>>, vector<1x1x16xf32>
    %c0_16 = arith.constant 0 : index
    %c8 = arith.constant 8 : index
    %c0_17 = arith.constant 0 : index
    %12 = vector.load %arg2[%c0_16, %c8, %c0_17] : memref<1x16x16xf32, #tpu.memory_space<vmem>>, vector<1x1x16xf32>
    %13 = arith.maximumf %10, %11 : vector<1x1x16xf32>
    %14 = arith.maximumf %13, %12 : vector<1x1x16xf32>
    %c0_18 = arith.constant 0 : index
    %c9 = arith.constant 9 : index
    %c0_19 = arith.constant 0 : index
    %15 = vector.load %arg2[%c0_18, %c9, %c0_19] : memref<1x16x16xf32, #tpu.memory_space<vmem>>, vector<1x1x16xf32>
    %c0_20 = arith.constant 0 : index
    %c10 = arith.constant 10 : index
    %c0_21 = arith.constant 0 : index
    %16 = vector.load %arg2[%c0_20, %c10, %c0_21] : memref<1x16x16xf32, #tpu.memory_space<vmem>>, vector<1x1x16xf32>
    %c0_22 = arith.constant 0 : index
    %c11 = arith.constant 11 : index
    %c0_23 = arith.constant 0 : index
    %17 = vector.load %arg2[%c0_22, %c11, %c0_23] : memref<1x16x16xf32, #tpu.memory_space<vmem>>, vector<1x1x16xf32>
    %18 = arith.maximumf %15, %16 : vector<1x1x16xf32>
    %19 = arith.maximumf %18, %17 : vector<1x1x16xf32>
    %c0_24 = arith.constant 0 : index
    %c12 = arith.constant 12 : index
    %c0_25 = arith.constant 0 : index
    %20 = vector.load %arg2[%c0_24, %c12, %c0_25] : memref<1x16x16xf32, #tpu.memory_space<vmem>>, vector<1x1x16xf32>
    %c0_26 = arith.constant 0 : index
    %c13 = arith.constant 13 : index
    %c0_27 = arith.constant 0 : index
    %21 = vector.load %arg2[%c0_26, %c13, %c0_27] : memref<1x16x16xf32, #tpu.memory_space<vmem>>, vector<1x1x16xf32>
    %c0_28 = arith.constant 0 : index
    %c14 = arith.constant 14 : index
    %c0_29 = arith.constant 0 : index
    %22 = vector.load %arg2[%c0_28, %c14, %c0_29] : memref<1x16x16xf32, #tpu.memory_space<vmem>>, vector<1x1x16xf32>
    %23 = arith.maximumf %20, %21 : vector<1x1x16xf32>
    %24 = arith.maximumf %23, %22 : vector<1x1x16xf32>
    %c0_30 = arith.constant 0 : index
    %c15 = arith.constant 15 : index
    %c0_31 = arith.constant 0 : index
    %25 = vector.load %arg2[%c0_30, %c15, %c0_31] : memref<1x16x16xf32, #tpu.memory_space<vmem>>, vector<1x1x16xf32>
    %26 = tpu.concatenate %4, %9, %14, %19, %24, %25 in 1 : vector<1x1x16xf32>, vector<1x1x16xf32>, vector<1x1x16xf32>, vector<1x1x16xf32>, vector<1x1x16xf32>, vector<1x1x16xf32> -> vector<1x6x16xf32>
    %27 = vector.extract_strided_slice %26 {offsets = [0, 0, 0], sizes = [1, 6, 1], strides = [1, 1, 1]} : vector<1x6x16xf32> to vector<1x6x1xf32>
    %28 = vector.extract_strided_slice %26 {offsets = [0, 0, 1], sizes = [1, 6, 1], strides = [1, 1, 1]} : vector<1x6x16xf32> to vector<1x6x1xf32>
    %29 = arith.maximumf %27, %28 : vector<1x6x1xf32>
    %30 = vector.extract_strided_slice %26 {offsets = [0, 0, 2], sizes = [1, 6, 1], strides = [1, 1, 1]} : vector<1x6x16xf32> to vector<1x6x1xf32>
    %31 = arith.maximumf %29, %30 : vector<1x6x1xf32>
    %32 = vector.extract_strided_slice %26 {offsets = [0, 0, 3], sizes = [1, 6, 1], strides = [1, 1, 1]} : vector<1x6x16xf32> to vector<1x6x1xf32>
    %33 = vector.extract_strided_slice %26 {offsets = [0, 0, 4], sizes = [1, 6, 1], strides = [1, 1, 1]} : vector<1x6x16xf32> to vector<1x6x1xf32>
    %34 = arith.maximumf %32, %33 : vector<1x6x1xf32>
    %35 = vector.extract_strided_slice %26 {offsets = [0, 0, 5], sizes = [1, 6, 1], strides = [1, 1, 1]} : vector<1x6x16xf32> to vector<1x6x1xf32>
    %36 = arith.maximumf %34, %35 : vector<1x6x1xf32>
    %37 = vector.extract_strided_slice %26 {offsets = [0, 0, 6], sizes = [1, 6, 1], strides = [1, 1, 1]} : vector<1x6x16xf32> to vector<1x6x1xf32>
    %38 = vector.extract_strided_slice %26 {offsets = [0, 0, 7], sizes = [1, 6, 1], strides = [1, 1, 1]} : vector<1x6x16xf32> to vector<1x6x1xf32>
    %39 = arith.maximumf %37, %38 : vector<1x6x1xf32>
    %40 = vector.extract_strided_slice %26 {offsets = [0, 0, 8], sizes = [1, 6, 1], strides = [1, 1, 1]} : vector<1x6x16xf32> to vector<1x6x1xf32>
    %41 = arith.maximumf %39, %40 : vector<1x6x1xf32>
    %42 = vector.extract_strided_slice %26 {offsets = [0, 0, 9], sizes = [1, 6, 1], strides = [1, 1, 1]} : vector<1x6x16xf32> to vector<1x6x1xf32>
    %43 = vector.extract_strided_slice %26 {offsets = [0, 0, 10], sizes = [1, 6, 1], strides = [1, 1, 1]} : vector<1x6x16xf32> to vector<1x6x1xf32>
    %44 = arith.maximumf %42, %43 : vector<1x6x1xf32>
    %45 = vector.extract_strided_slice %26 {offsets = [0, 0, 11], sizes = [1, 6, 1], strides = [1, 1, 1]} : vector<1x6x16xf32> to vector<1x6x1xf32>
    %46 = arith.maximumf %44, %45 : vector<1x6x1xf32>
    %47 = vector.extract_strided_slice %26 {offsets = [0, 0, 12], sizes = [1, 6, 1], strides = [1, 1, 1]} : vector<1x6x16xf32> to vector<1x6x1xf32>
    %48 = vector.extract_strided_slice %26 {offsets = [0, 0, 13], sizes = [1, 6, 1], strides = [1, 1, 1]} : vector<1x6x16xf32> to vector<1x6x1xf32>
    %49 = arith.maximumf %47, %48 : vector<1x6x1xf32>
    %50 = vector.extract_strided_slice %26 {offsets = [0, 0, 14], sizes = [1, 6, 1], strides = [1, 1, 1]} : vector<1x6x16xf32> to vector<1x6x1xf32>
    %51 = arith.maximumf %49, %50 : vector<1x6x1xf32>
    %52 = vector.extract_strided_slice %26 {offsets = [0, 0, 15], sizes = [1, 6, 1], strides = [1, 1, 1]} : vector<1x6x16xf32> to vector<1x6x1xf32>
    %53 = tpu.concatenate %31, %36, %41, %46, %51, %52 in 2 : vector<1x6x1xf32>, vector<1x6x1xf32>, vector<1x6x1xf32>, vector<1x6x1xf32>, vector<1x6x1xf32>, vector<1x6x1xf32> -> vector<1x6x6xf32>
    %c0_32 = arith.constant 0 : index
    %c0_33 = arith.constant 0 : index
    %c0_34 = arith.constant 0 : index
    %54 = vector.load %arg3[%c0_32, %c0_33, %c0_34] : memref<1x6x6xf32, #tpu.memory_space<vmem>>, vector<1x6x6xf32>
    tpu.vector_store %arg3[%c0_32, %c0_33, %c0_34], %53 {strides = array<i32>} : memref<1x6x6xf32, #tpu.memory_space<vmem>>, vector<1x6x6xf32>,
    return
  }
  func.func @transform_0(%arg0: i32, %arg1: i32) -> (i32, i32, i32) {
    %c0_i32 = arith.constant 0 : i32
    %c0_i32_0 = arith.constant 0 : i32
    return %arg0, %arg1, %c0_i32 : i32, i32, i32
  }
  func.func @transform_1(%arg0: i32, %arg1: i32) -> (i32, i32, i32) {
    %c0_i32 = arith.constant 0 : i32
    %c0_i32_0 = arith.constant 0 : i32
    return %arg0, %arg1, %c0_i32 : i32, i32, i32
  }
}

</mosaic_0001>

<bundles_post_ra>
// kernel: tpu_custom_call.1
= control target key start
LH: loop header
LB: loop body
LE: loop exit
PB: predicated region body
PF: predicated region fallthrough
CT: control target
= control target key end

     0   :  { %6 = vsyncpa [#allocation3], 0  ;;  %s600_s0 = inlined_call_operand.hbm [shape: f32[8,16,16], index: 0, kind: input, shape index: {}]   ;;  %s601_s1 = inlined_call_operand.vmem [shape: f32[8,6,6], index: 1, kind: output, shape index: {}]  }
   0x1   :  { %8 = vsyncpa [#allocation3 + $0x1], 0  ;;  %s512_s6 = smov 0   ;;  %s514_s7 = smov 0  }
   0x2   :  { %s516_s8 = smov 0   ;;  %s518_s9 = smov 0  }
   0x3   :  { %s520_s10 = smov 0   ;;  %s522_s11 = smov 0  }
   0x4 LB: > { %s336_s12 = sadd.s32 4294967295, %s492_s11   ;;  %s26_s13 = sadd.s32 1, %s488_s10  ;;  %s492_s11 = sphi %s522_s11, %s14_s11   ;;  %s488_s10 = sphi %s520_s10, %s608_s10   ;;  %s484_s9 = sphi %s518_s9, %s607_s9   ;;  %s480_s8 = sphi %s516_s8, %s606_s8   ;;  %s476_s7 = sphi %s514_s7, %s605_s7   ;;  %s472_s6 = sphi %s512_s6, %s604_s6  }
   0x5   : > { %p28_p0 = scmp.ge.s32.totalorder %s26_s13, 8  ;;  %s35_s14 = sadd.s32 1, %s480_s8 }
   0x6   : > { %p42_p1 = scmp.ne.s32.totalorder %s480_s8, %s476_s7  ;;  %p43_p2 = scmp.eq.s32.totalorder %s492_s11, 0 }
   0x7   : > { %s610_s13 = smov (%p28_p0, %s26_s13), 0  ;;  %p48_p4 = scmp.ne.s32.totalorder %s476_s7, %s472_s6 }
   0x8   : > { %p548_p3 = por %p43_p2, %p42_p1  ;;  %s30_s16 = ssub.s32 %s488_s10, %s610_s13 }
   0x9   : > { %p49_p5 = scmp.eq.s32.totalorder %s336_s12, 0  ;;  %p33_p6 = scmp.eq.s32.totalorder %s30_s16, 0 }
   0xa   : > { %p355_p8 = scmp.lt.s32.totalorder %s492_s11, 8  ;;  %s100_s19 = sand.u32 1, %s480_s8  }
   0xb   : > { %p555_p7 = por %p49_p5, %p48_p4  ;;  %s348_s20 = sshll.u32 %s488_s10, 4 }
   0xc   : > { %s561_s18 = scalar_select %p33_p6, %s480_s8, %s35_s14  }
   0xd   : > { %s340_s21 = sshll.u32 %s100_s19, 4  ;;  %s111_s24 = scalar_lea.hbm %s600_s0, %s348_s20 }
   0xe   : > { %s112_s25 = sshll.u32 %s111_s24, 4  ;;  %s104_s26 = scalar_lea.vmem [#allocation2], %s340_s21  ;;  %s113_s25 = int_to_ptr.hbm [resolvable:$true] %s112_s25 }
   0xf   : > { %s114_s27 = sshll.u32 %s104_s26, 4  ;;  %p352_p9 = pnand %p355_p8, %p548_p3  ;;  %s115_s27 = int_to_ptr.vmem [resolvable:$true] %s114_s27 }
  0x10   : > { %p343_p10 = scmp.ge.s32.totalorder %s492_s11, 1  ;;  %p122_p11 = scmp.lt.s32.totalorder %s492_s11, 9 }
  0x11   : > { %s101_s28 = scalar_lea.sflag [#allocation3], %s100_s19  ;;  %s494_s29 = smov 128  }
  0x12   : > { %s495_s30 = smov 8   ;;  %p123_p12 = pnand %p343_p10, %p122_p11 }
  0x13   : > { %354 = dma.hbm_to_vmem [thread:$0]  (!%p352_p9), %s113_s25, 256, %s115_s27, %s101_s28, %s494_s29, %s494_s29, %s495_s30  }
  0x14   : > { %126 = sbr.rel (%p123_p12) target bundleno = 292 (0x124), region = 24  ;;  %s128_s2 = sand.u32 (!%p123_p12), 1, %s476_s7  }
  0x15   : > { %s344_s3 = sshll.u32 (!%p123_p12), %s128_s2, 4  ;;  %s129_s4 = scalar_lea.sflag (!%p123_p12), [#allocation3], %s128_s2 }
  0x16   : > { %s132_s5 = scalar_lea.vmem (!%p123_p12), [#allocation2], %s344_s3 }
  0x19   : > { %467 = dma.done.wait (%p555_p7), %s129_s4, 256  }
  0x1a   : > { %469 = vsyncadd (%p555_p7), %s129_s4, 4294967040  ;;  %v162_v0 = vld [vmem:[%s132_s5] sm:$0x1]  ;;  %v163_v1 = vld [vmem:[%s132_s5 + $0x1] sm:$0x1]  ;;  %vm203_vm0 = vcmask 1040384  }
  0x1b   : > { %v164_v2 = vld [vmem:[%s132_s5 + $0x2] sm:$0x1]  ;;  %v165_v3 = vmax.f32 %v162_v0, %v163_v1  ;;  %v167_v4 = vld [vmem:[%s132_s5 + $0x3] sm:$0x1]  ;;  %v168_v5 = vld [vmem:[%s132_s5 + $0x4] sm:$0x1] }
  0x1c   : > { %v169_v6 = vld [vmem:[%s132_s5 + $0x5] sm:$0x1]  ;;  %v170_v7 = vmax.f32 %v167_v4, %v168_v5  ;;  %v172_v8 = vld [vmem:[%s132_s5 + $0x6] sm:$0x1]  ;;  %v173_v9 = vld [vmem:[%s132_s5 + $0x7] sm:$0x1] }
  0x1d   : > { %v174_v10 = vld [vmem:[%s132_s5 + $0x8] sm:$0x1]  ;;  %v175_v11 = vmax.f32 %v172_v8, %v173_v9  ;;  %v177_v12 = vld [vmem:[%s132_s5 + $0x9] sm:$0x1]  ;;  %v178_v13 = vld [vmem:[%s132_s5 + $0xa] sm:$0x1]  ;;  %v166_v15 = vmax.f32 %v165_v3, %v164_v2 }
  0x1e   : > { %v179_v14 = vld [vmem:[%s132_s5 + $0xb] sm:$0x1]  ;;  %v171_v16 = vmax.f32 %v170_v7, %v169_v6  ;;  %v180_v17 = vmax.f32 %v177_v12, %v178_v13  ;;  %v182_v18 = vld [vmem:[%s132_s5 + $0xc] sm:$0x1]  ;;  %v183_v19 = vld [vmem:[%s132_s5 + $0xd] sm:$0x1] }
  0x1f   : > { %v184_v20 = vld [vmem:[%s132_s5 + $0xe] sm:$0x1]  ;;  %v176_v21 = vmax.f32 %v175_v11, %v174_v10  ;;  %v185_v22 = vmax.f32 %v182_v18, %v183_v19  ;;  %v187_v23 = vld [vmem:[%s132_s5 + $0xf] sm:$0x1]  ;;  %vm205_vm1 = vcmask 1041408   ;;  %vm207_vm2 = vcmask 1042432  }
  0x20   : > { %v181_v24 = vmax.f32 %v180_v17, %v179_v14  ;;  %v189_v25 = vrot.slane %v171_v16, 7  ;;  %v201_v29 = vrot.slane %v187_v23, 3  ;;  %vm209_vm3 = vcmask 1043456   ;;  %s496_s6 = smov 127   ;;  %s497_s12 = smov 126  }
  0x21   : > { %v186_v26 = vmax.f32 %v185_v22, %v184_v20  ;;  %v192_v27 = vrot.slane %v176_v21, 6  ;;  %vm211_vm4 = vcmask 1044480   ;;  %s498_s14 = smov 118   ;;  %s499_s15 = smov 122   ;;  %vm238_vm5 = vcmask 7168  }
  0x22   : > { %v195_v28 = vrot.slane %v181_v24, 5  ;;  %v204_v30 = vsel %vm203_vm0, %v166_v15, %v189_v25  ;;  %s500_s16 = smov 120   ;;  %s501_s17 = smov 124   ;;  %vm240_vm6 = vcmask 15360   ;;  %vm242_vm7 = vcmask 23552  }
  0x23   : > { %v198_v31 = vrot.slane %v186_v26, 4  ;;  %v206_v32 = vsel %vm205_vm1, %v204_v30, %v192_v27  ;;  %p155_p13 = scmp.lt.s32.totalorder %s484_s9, 7  ;;  %vm244_vm8 = vcmask 31744   ;;  %vm246_vm9 = vcmask 39936  }
  0x24   : > { %v208_v33 = vsel %vm207_vm2, %v206_v32, %v195_v28  ;;  %vm248_vm10 = vcmask 46080  }
  0x25   : > { %v210_v34 = vsel %vm209_vm3, %v208_v33, %v198_v31  ;;  %s612_s9 = smov (!%p155_p13, %s484_s9), 7 }
  0x26   : > { %v212_v35 = vsel %vm211_vm4, %v210_v34, %v201_v29  ;;  %s345_s19 = sshll.u32 %s612_s9, 3 }
  0x27   : > { %214 = vrot.lane.b32.xlu0 %v212_v35, %s496_s6  ;;  %s161_s22 = scalar_lea.vmem %s601_s1, %s345_s19 }
  0x2f   : > { %218 = vrot.lane.b32.xlu0 %v212_v35, %s497_s12 }
  0x37   : > { %235 = vrot.lane.b32.xlu0 %v212_v35, %s498_s14 }
  0x99   : > { %v215_v36 = vpop.permute.xlu0 %214 }
  0x9a   : > { %v217_v37 = vmax.f32 %v212_v35, %v215_v36 }
  0xa1   : > { %v219_v38 = vpop.permute.xlu0 %218 }
  0xa2   : > { %v221_v39 = vmax.f32 %v217_v37, %v219_v38 }
  0xa4   : > { %229 = vrot.lane.b32.xlu2 %v221_v39, %s499_s15  ;;  %223 = vrot.lane.b32.xlu1 %v221_v39, %s497_s12 }
  0xa9   : > { %v236_v45 = vpop.permute.xlu0 %235 }
  0xac   : > { %232 = vrot.lane.b32.xlu2 %v221_v39, %s500_s16  ;;  %226 = vrot.lane.b32.xlu1 %v221_v39, %s501_s17 }
  0xfe   : > { %v230_v40 = vpop.permute.xlu2 %229 }
 0x106   : > { %v233_v46 = vpop.permute.xlu2 %232 }
 0x116   : > { %v224_v41 = vpop.permute.xlu1 %223 }
 0x117   : > { %v239_v42 = vsel %vm238_vm5, %v221_v39, %v224_v41 }
 0x11e   : > { %v227_v43 = vpop.permute.xlu1 %226 }
 0x11f   : > { %v241_v44 = vsel %vm240_vm6, %v239_v42, %v227_v43 }
 0x120   : > { %v243_v47 = vsel %vm242_vm7, %v241_v44, %v230_v40 }
 0x121   : > { %v245_v48 = vsel %vm244_vm8, %v243_v47, %v233_v46 }
 0x122   : > { %v247_v49 = vsel %vm246_vm9, %v245_v48, %v236_v45 }
 0x123   : > { %249 = vst.msk [vmem:[%s161_s22] sm:$0x3f] %vm248_vm10, %v247_v49 }
 0x124 PF: > { %s14_s11 = sadd.s32 1, %s492_s11   ;;  %s604_s6 = smov %s476_s7 }
 0x125   : > { %p11_p0 = scmp.ge.s32.totalorder %s14_s11, 10   ;;  %s605_s7 = smov %s480_s8 }
 0x126   : > { %s606_s8 = smov %s561_s18  ;;  %s607_s9 = smov %s488_s10 }
 0x127   : > { %s608_s10 = smov %s610_s13  ;;  %13 = sbr.rel (!%p11_p0) target bundleno = 4 (0x4), region = 64 }
 0x12c   :  { %275 = vsyncpa [#allocation3], 1 }
 0x12d   :  { %277 = vsyncpa [#allocation3 + $0x1], 1 }

</bundles_post_ra>
